<compile_context>
chip_gen: v7x
topology: tpu7x:2x2x1
jax: 0.10.0
libtpu: 0.0.40
codegen_flags: <defaults>
</compile_context>

<pallas_src>
import functools

import jax
import jax.numpy as jnp
from jax.experimental import pallas as pl
from jax.experimental.pallas import tpu as pltpu

LANE = 128
SUBLANE_BF16 = 16  # bf16 packs 16 rows per (sublane, lane) vreg tile


def _round_up(n, m):
    return ((n + m - 1) // m) * m


def _cdiv(a, b):
    return (a + b - 1) // b


# ----------------------------------------------------------------------------
# Kernel
# ----------------------------------------------------------------------------
def dqn_kernel(x_ref, w1_ref, w2_ref, w3_ref, w4_ref, out_ref):
    # Biases travel through the MXU via a constant-1 "ones channel" living in
    # the zero-padding of each activation, so every layer is a single matmul
    # (bf16 inputs, f32 accumulation) followed by a bf16 ReLU — no broadcast
    # bias adds on the VPU.
    h = jnp.dot(x_ref[...], w1_ref[...], preferred_element_type=jnp.float32)
    h = jnp.maximum(h.astype(jnp.bfloat16), 0)
    h = jnp.dot(h, w2_ref[...], preferred_element_type=jnp.float32)
    h = jnp.maximum(h.astype(jnp.bfloat16), 0)
    h = jnp.dot(h, w3_ref[...], preferred_element_type=jnp.float32)
    h = jnp.maximum(h.astype(jnp.bfloat16), 0)
    y = jnp.dot(h, w4_ref[...], preferred_element_type=jnp.float32)
    out_ref[...] = y.astype(out_ref.dtype)


# ----------------------------------------------------------------------------
# Parameter / input preparation (host side, done once)
# ----------------------------------------------------------------------------
def pad_params(params):
    """Zero-pad every layer to lane multiples and fold biases into the weights.

    For every non-final layer we reserve one padded output column as a
    constant-1 channel (w=0 everywhere except a single 1 on the previous ones
    row; ReLU keeps it at 1) and write the layer's bias into the padded weight
    row addressed by the previous ones channel.  Weights are stored bf16.
    Padded columns of the final layer are exactly 0 (never argmax over the
    padded output — always slice first).
    """
    ws, bs = params[0::2], params[1::2]
    n_layers = len(ws)
    padded = []
    for l, (w, b) in enumerate(zip(ws, bs)):
        d_in, d_out = w.shape
        last = l == n_layers - 1
        p_in = _round_up(d_in + 1, LANE)                      # +1: ones channel in
        p_out = _round_up(d_out, LANE) if last else _round_up(d_out + 1, LANE)
        w_p = jnp.zeros((p_in, p_out), jnp.float32)
        w_p = w_p.at[:d_in, :d_out].set(w.astype(jnp.float32))
        w_p = w_p.at[d_in, :d_out].set(b.reshape(-1).astype(jnp.float32))  # bias row
        if not last:
            w_p = w_p.at[d_in, d_out].set(1.0)                # propagate ones channel
        padded.append(w_p.astype(jnp.bfloat16))
    return tuple(padded)


def schedule(batch, max_block_b=4096):
    """Pick (block_b, batch_pad): multiples of 16, no big tail-padding cliff,
    and >= 2 grid steps whenever the batch allows it (v7x dual TensorCore)."""
    rows = _round_up(max(batch, 1), SUBLANE_BF16)
    n_tiles = _cdiv(rows, max_block_b)
    if rows >= 2 * SUBLANE_BF16:          # splitting costs no extra padding
        n_tiles = max(n_tiles, 2)
    block_b = _round_up(_cdiv(rows, n_tiles), SUBLANE_BF16)
    batch_pad = block_b * n_tiles
    return block_b, batch_pad


def pad_input(x, in_pad, batch_pad):
    """Pad/cast x once where it is produced: (batch, d_in) f32 ->
    (batch_pad, in_pad) bf16, with the constant-1 ones channel at column d_in
    that carries the biases through the MXU. Padded rows stay all-zero."""
    batch, d_in = x.shape
    x_p = jnp.zeros((batch_pad, in_pad), jnp.bfloat16)
    x_p = x_p.at[:batch, :d_in].set(x.astype(jnp.bfloat16))
    x_p = x_p.at[:batch, d_in].set(jnp.bfloat16(1.0))
    return x_p


# ----------------------------------------------------------------------------
# Forward
# ----------------------------------------------------------------------------
@functools.partial(jax.jit, static_argnames=("block_b",))
def dqn_forward_padded(x_p, padded_weights, *, block_b):
    """Run the fused MLP on a pre-padded bf16 input; returns padded bf16 Q's."""
    batch_pad, in_pad = x_p.shape
    out_pad = padded_weights[-1].shape[1]
    grid = (batch_pad // block_b,)

    def resident(w):
        # Full-array block with a constant index_map: the (tiny) weights stay
        # VMEM-resident across all batch tiles — no per-step re-DMA.
        return pl.BlockSpec(w.shape, lambda i: (0, 0))

    return pl.pallas_call(
        dqn_kernel,
        out_shape=jax.ShapeDtypeStruct((batch_pad, out_pad), jnp.bfloat16),
        grid=grid,
        in_specs=[pl.BlockSpec((block_b, in_pad), lambda i: (i, 0))]
        + [resident(w) for w in padded_weights],
        out_specs=pl.BlockSpec((block_b, out_pad), lambda i: (i, 0)),
        compiler_params=pltpu.CompilerParams(
            dimension_semantics=("parallel",)),
    )(x_p, *padded_weights)


def dqn_forward(x, padded_weights, *, out_features, max_block_b=4096):
    """Convenience wrapper: pad x (prefer pad_input() at the producer in a real
    training loop), run the kernel, slice the real Q-values, return f32."""
    batch = x.shape[0]
    in_pad = padded_weights[0].shape[0]
    block_b, batch_pad = schedule(batch, max_block_b)
    x_p = pad_input(x, in_pad, batch_pad)
    out_p = dqn_forward_padded(x_p, padded_weights, block_b=block_b)
    return out_p[:batch, :out_features].astype(jnp.float32)


# ----------------------------------------------------------------------------
# Init + references
# ----------------------------------------------------------------------------
def init_params(key, input_size, hidden_size, output_size):
    """Mimics nn.Linear's U(-1/sqrt(fan_in), 1/sqrt(fan_in)); weights [in, out]."""
    dims = [input_size, hidden_size[0], hidden_size[1], hidden_size[2], output_size]
    params = []
    for i in range(4):
        fan_in, fan_out = dims[i], dims[i + 1]
        key, kw, kb = jax.random.split(key, 3)
        bound = 1.0 / jnp.sqrt(jnp.float32(fan_in))
        w = jax.random.uniform(kw, (fan_in, fan_out), jnp.float32, -bound, bound)
        b = jax.random.uniform(kb, (1, fan_out), jnp.float32, -bound, bound)
        params += [w, b]
    return tuple(params)


def reference_forward_f32(x, params):
    w1, b1, w2, b2, w3, b3, w4, b4 = params
    h = jnp.maximum(x @ w1 + b1, 0.0)
    h = jnp.maximum(h @ w2 + b2, 0.0)
    h = jnp.maximum(h @ w3 + b3, 0.0)
    return h @ w4 + b4


def reference_forward_bf16(x, params):
    """Mirror of the kernel numerics: bf16 MXU inputs (activations, weights and
    folded biases), f32 accumulation, bf16 ReLU, bf16-stored output."""
    bf = jnp.bfloat16
    w1, b1, w2, b2, w3, b3, w4, b4 = params
    h = x.astype(bf)
    for w, b, relu in ((w1, b1, True), (w2, b2, True), (w3, b3, True), (w4, b4, False)):
        y = jnp.dot(h, w.astype(bf), preferred_element_type=jnp.float32)
        y = y + b.astype(bf).astype(jnp.float32)
        h = jnp.maximum(y.astype(bf), 0) if relu else y.astype(bf)
    return h.astype(jnp.float32)


# ----------------------------------------------------------------------------
if __name__ == "__main__":
    key = jax.random.PRNGKey(0)

    # Small shapes consistent with the module (state -> Q-values).
    batch = 8
    input_size = 16
    hidden_size = (32, 64, 32)
    output_size = 4

    k_x, k_p = jax.random.split(key)
    x = jax.random.normal(k_x, (batch, input_size), jnp.float32)
    params = init_params(k_p, input_size, hidden_size, output_size)
    padded_weights = pad_params(params)

    out = dqn_forward(x, padded_weights, out_features=output_size)
    out = jax.block_until_ready(out)

    assert out.shape == (batch, output_size)

    ref_bf16 = reference_forward_bf16(x, params)
    ref_f32 = reference_forward_f32(x, params)
    assert jnp.allclose(out, ref_bf16, atol=1e-2, rtol=1e-2), \
        "mismatch vs bf16-mirror reference"
    assert jnp.allclose(out, ref_f32, atol=5e-2, rtol=5e-2), \
        "mismatch vs f32 reference"

    print("KERNEL_OK")
</pallas_src>

<mosaic_0001>
module attributes {stable_mosaic.version = 11 : i64} {
  func.func @dqn_kernel(%arg0: i32, %arg1: memref<16x128xbf16, #tpu.memory_space<vmem>>, %arg2: memref<128x128xbf16, #tpu.memory_space<vmem>>, %arg3: memref<128x128xbf16, #tpu.memory_space<vmem>>, %arg4: memref<128x128xbf16, #tpu.memory_space<vmem>>, %arg5: memref<128x128xbf16, #tpu.memory_space<vmem>>, %arg6: memref<16x128xbf16, #tpu.memory_space<vmem>>) attributes {dimension_semantics = [#tpu.dimension_semantics<parallel>], iteration_bounds = array<i64: 1>, scalar_prefetch = 0 : i64, scratch_operands = 0 : i64, tpu.core_type = #tpu.core_type<tc>, window_params = [{transform_indices = @transform_0, window_bounds = array<i64: 16, 128>}, {pipeline_mode = #tpu.pipeline_mode<synchronous>, transform_indices = @transform_1, window_bounds = array<i64: 128, 128>}, {pipeline_mode = #tpu.pipeline_mode<synchronous>, transform_indices = @transform_2, window_bounds = array<i64: 128, 128>}, {pipeline_mode = #tpu.pipeline_mode<synchronous>, transform_indices = @transform_3, window_bounds = array<i64: 128, 128>}, {pipeline_mode = #tpu.pipeline_mode<synchronous>, transform_indices = @transform_4, window_bounds = array<i64: 128, 128>}, {transform_indices = @transform_5, window_bounds = array<i64: 16, 128>}]} {
    %c0 = arith.constant 0 : index
    %c0_0 = arith.constant 0 : index
    %0 = vector.load %arg1[%c0, %c0_0] : memref<16x128xbf16, #tpu.memory_space<vmem>>, vector<16x128xbf16>
    %c0_1 = arith.constant 0 : index
    %c0_2 = arith.constant 0 : index
    %1 = vector.load %arg2[%c0_1, %c0_2] : memref<128x128xbf16, #tpu.memory_space<vmem>>, vector<128x128xbf16>
    %cst = arith.constant dense<0.000000e+00> : vector<16x128xf32>
    %2 = tpu.matmul %0, %1, %cst {dimension_numbers = #tpu.dot_dimension_numbers<[1], [0], [0], [1], [0, 0, 1, 1], [], []>} : vector<16x128xbf16>, vector<128x128xbf16>, vector<16x128xf32> -> vector<16x128xf32>
    %3 = arith.truncf %2 : vector<16x128xf32> to vector<16x128xbf16>
    %cst_3 = arith.constant 0.000000e+00 : bf16
    %4 = vector.broadcast %cst_3 : bf16 to vector<16x128xbf16>
    %5 = arith.maximumf %3, %4 : vector<16x128xbf16>
    %c0_4 = arith.constant 0 : index
    %c0_5 = arith.constant 0 : index
    %6 = vector.load %arg3[%c0_4, %c0_5] : memref<128x128xbf16, #tpu.memory_space<vmem>>, vector<128x128xbf16>
    %cst_6 = arith.constant dense<0.000000e+00> : vector<16x128xf32>
    %7 = tpu.matmul %5, %6, %cst_6 {dimension_numbers = #tpu.dot_dimension_numbers<[1], [0], [0], [1], [0, 0, 1, 1], [], []>} : vector<16x128xbf16>, vector<128x128xbf16>, vector<16x128xf32> -> vector<16x128xf32>
    %8 = arith.truncf %7 : vector<16x128xf32> to vector<16x128xbf16>
    %cst_7 = arith.constant 0.000000e+00 : bf16
    %9 = vector.broadcast %cst_7 : bf16 to vector<16x128xbf16>
    %10 = arith.maximumf %8, %9 : vector<16x128xbf16>
    %c0_8 = arith.constant 0 : index
    %c0_9 = arith.constant 0 : index
    %11 = vector.load %arg4[%c0_8, %c0_9] : memref<128x128xbf16, #tpu.memory_space<vmem>>, vector<128x128xbf16>
    %cst_10 = arith.constant dense<0.000000e+00> : vector<16x128xf32>
    %12 = tpu.matmul %10, %11, %cst_10 {dimension_numbers = #tpu.dot_dimension_numbers<[1], [0], [0], [1], [0, 0, 1, 1], [], []>} : vector<16x128xbf16>, vector<128x128xbf16>, vector<16x128xf32> -> vector<16x128xf32>
    %13 = arith.truncf %12 : vector<16x128xf32> to vector<16x128xbf16>
    %cst_11 = arith.constant 0.000000e+00 : bf16
    %14 = vector.broadcast %cst_11 : bf16 to vector<16x128xbf16>
    %15 = arith.maximumf %13, %14 : vector<16x128xbf16>
    %c0_12 = arith.constant 0 : index
    %c0_13 = arith.constant 0 : index
    %16 = vector.load %arg5[%c0_12, %c0_13] : memref<128x128xbf16, #tpu.memory_space<vmem>>, vector<128x128xbf16>
    %cst_14 = arith.constant dense<0.000000e+00> : vector<16x128xf32>
    %17 = tpu.matmul %15, %16, %cst_14 {dimension_numbers = #tpu.dot_dimension_numbers<[1], [0], [0], [1], [0, 0, 1, 1], [], []>} : vector<16x128xbf16>, vector<128x128xbf16>, vector<16x128xf32> -> vector<16x128xf32>
    %18 = arith.truncf %17 : vector<16x128xf32> to vector<16x128xbf16>
    %c0_15 = arith.constant 0 : index
    %c0_16 = arith.constant 0 : index
    %19 = vector.load %arg6[%c0_15, %c0_16] : memref<16x128xbf16, #tpu.memory_space<vmem>>, vector<16x128xbf16>
    tpu.vector_store %arg6[%c0_15, %c0_16], %18 {strides = array<i32>} : memref<16x128xbf16, #tpu.memory_space<vmem>>, vector<16x128xbf16>,
    return
  }
  func.func @transform_0(%arg0: i32) -> (i32, i32) {
    %c0_i32 = arith.constant 0 : i32
    %c0_i32_0 = arith.constant 0 : i32
    return %arg0, %c0_i32 : i32, i32
  }
  func.func @transform_1(%arg0: i32) -> (i32, i32) {
    %c0_i32 = arith.constant 0 : i32
    %c0_i32_0 = arith.constant 0 : i32
    %c0_i32_1 = arith.constant 0 : i32
    return %c0_i32, %c0_i32_0 : i32, i32
  }
  func.func @transform_2(%arg0: i32) -> (i32, i32) {
    %c0_i32 = arith.constant 0 : i32
    %c0_i32_0 = arith.constant 0 : i32
    %c0_i32_1 = arith.constant 0 : i32
    return %c0_i32, %c0_i32_0 : i32, i32
  }
  func.func @transform_3(%arg0: i32) -> (i32, i32) {
    %c0_i32 = arith.constant 0 : i32
    %c0_i32_0 = arith.constant 0 : i32
    %c0_i32_1 = arith.constant 0 : i32
    return %c0_i32, %c0_i32_0 : i32, i32
  }
  func.func @transform_4(%arg0: i32) -> (i32, i32) {
    %c0_i32 = arith.constant 0 : i32
    %c0_i32_0 = arith.constant 0 : i32
    %c0_i32_1 = arith.constant 0 : i32
    return %c0_i32, %c0_i32_0 : i32, i32
  }
  func.func @transform_5(%arg0: i32) -> (i32, i32) {
    %c0_i32 = arith.constant 0 : i32
    %c0_i32_0 = arith.constant 0 : i32
    return %arg0, %c0_i32 : i32, i32
  }
}

</mosaic_0001>

<bundles_post_ra>
// kernel: dqn_forward_padded.1
= control target key start
LH: loop header
LB: loop body
LE: loop exit
PB: predicated region body
PF: predicated region fallthrough
CT: control target
= control target key end

     0   :  { %10 = vsyncpa [#allocation3], 0  ;;  %s1080_s0 = inlined_call_operand.hbm [shape: bf16[16,128], index: 0, kind: input, shape index: {}]   ;;  %s1081_s1 = inlined_call_operand.hbm [shape: bf16[128,128], index: 1, kind: input, shape index: {}]   ;;  %s1082_s2 = inlined_call_operand.hbm [shape: bf16[128,128], index: 2, kind: input, shape index: {}]   ;;  %s1083_s3 = inlined_call_operand.hbm [shape: bf16[128,128], index: 3, kind: input, shape index: {}]   ;;  %s1084_s4 = inlined_call_operand.hbm [shape: bf16[128,128], index: 4, kind: input, shape index: {}]   ;;  %s1085_s5 = inlined_call_operand.hbm [shape: bf16[16,128], index: 5, kind: output, shape index: {}]  }
   0x1   :  { %11 = vsyncpa [#allocation6], 0 }
   0x2   :  { %12 = vsyncpa [#allocation9], 0 }
   0x3   :  { %13 = vsyncpa [#allocation4], 0  ;;  %s895_s18 = smov [#allocation5]   ;;  %s896_s20 = smov [#allocation8]  }
   0x4   :  { %s31_s19 = sshll.u32 %s895_s18, 4  ;;  %s55_s21 = sshll.u32 %s896_s20, 4  ;;  %s32_s19 = int_to_ptr.vmem [resolvable:$true] %s31_s19  ;;  %s936_s21 = int_to_ptr.vmem [resolvable:$true] %s55_s21 }
   0x5   :  { %s755_s24 = scalar_lea.hbm %s1081_s1, 1024 }
   0x6   :  { %p756_p0 = scmp.ne.s32.totalorder %s1081_s1, %s755_s24  ;;  %p759_p1 = scmp.lt.u32.totalorder %s755_s24, %s1081_s1 }
   0x8   :  { %p761_p2 = pnand %p759_p1, %p756_p0 }
   0xa   :  { %764 = shalt.err (!%p761_p2)
}
   0xb   :  { %s765_s29 = scalar_lea.vmem %s32_s19, 1024  ;;  %p770_p4 = scmp.lt.s32.totalorder %s32_s19, %s32_s19 }
   0xc   :  { %p766_p3 = scmp.ne.s32.totalorder %s32_s19, %s765_s29  ;;  %p771_p5 = scmp.lt.s32.totalorder %s765_s29, %s765_s29 }
   0xe   :  { %p772_p6 = por %p771_p5, %p770_p4 }
  0x10   :  { %p773_p7 = pnand %p772_p6, %p766_p3 }
  0x12   :  { %776 = shalt.err (!%p773_p7)
}
  0x13   :  { %s897_s30 = smov 64   ;;  %s898_s6 = smov 4  }
  0x14   :  { %37 = dma.hbm_to_vmem [thread:$0]  %s1081_s1, 1024, %s32_s19, [#allocation6], %s897_s30, %s897_s30, %s898_s6  }
  0x15   :  { %s777_s11 = scalar_lea.hbm %s1083_s3, 1024 }
  0x16   :  { %p778_p8 = scmp.ne.s32.totalorder %s1083_s3, %s777_s11  ;;  %p781_p9 = scmp.lt.u32.totalorder %s777_s11, %s1083_s3 }
  0x18   :  { %p783_p10 = pnand %p781_p9, %p778_p8 }
  0x1a   :  { %786 = shalt.err (!%p783_p10)
}
  0x1b   :  { %s787_s16 = scalar_lea.vmem %s936_s21, 1024  ;;  %p792_p12 = scmp.lt.s32.totalorder %s936_s21, %s936_s21 }
  0x1c   :  { %p788_p11 = scmp.ne.s32.totalorder %s936_s21, %s787_s16  ;;  %p793_p13 = scmp.lt.s32.totalorder %s787_s16, %s787_s16 }
  0x1e   :  { %p794_p0 = por %p793_p13, %p792_p12 }
  0x20   :  { %p795_p1 = pnand %p794_p0, %p788_p11 }
  0x22   :  { %798 = shalt.err (!%p795_p1)
}
  0x23   :  { %61 = dma.hbm_to_vmem [thread:$0]  %s1083_s3, 1024, %s936_s21, [#allocation9], %s897_s30, %s897_s30, %s898_s6  }
  0x24   :  { %s899_s18 = smov [#allocation2]   ;;  %s900_s20 = smov [#allocation7]  }
  0x25   :  { %s19_s19 = sshll.u32 %s899_s18, 4  ;;  %s43_s22 = sshll.u32 %s900_s20, 4  ;;  %s20_s19 = int_to_ptr.vmem [resolvable:$true] %s19_s19  ;;  %s973_s22 = int_to_ptr.vmem [resolvable:$true] %s43_s22 }
  0x26   :  { %s799_s25 = scalar_lea.hbm %s1080_s0, 128 }
  0x27   :  { %p800_p2 = scmp.ne.s32.totalorder %s1080_s0, %s799_s25  ;;  %p803_p3 = scmp.lt.u32.totalorder %s799_s25, %s1080_s0 }
  0x29   :  { %p805_p4 = pnand %p803_p3, %p800_p2 }
  0x2b   :  { %808 = shalt.err (!%p805_p4)
}
  0x2c   :  { %s809_s3 = scalar_lea.vmem %s20_s19, 128  ;;  %p814_p6 = scmp.lt.s32.totalorder %s20_s19, %s20_s19 }
  0x2d   :  { %p810_p5 = scmp.ne.s32.totalorder %s20_s19, %s809_s3  ;;  %p815_p7 = scmp.lt.s32.totalorder %s809_s3, %s809_s3 }
  0x2f   :  { %p816_p8 = por %p815_p7, %p814_p6 }
  0x31   :  { %p817_p9 = pnand %p816_p8, %p810_p5 }
  0x33   :  { %820 = shalt.err (!%p817_p9)
}
  0x34   :  { %25 = dma.hbm_to_vmem [thread:$0]  %s1080_s0, 128, %s20_s19, [#allocation3], %s897_s30, %s897_s30, %s898_s6  }
  0x35   :  { %s821_s10 = scalar_lea.hbm %s1082_s2, 1024 }
  0x36   :  { %p822_p10 = scmp.ne.s32.totalorder %s1082_s2, %s821_s10  ;;  %p825_p11 = scmp.lt.u32.totalorder %s821_s10, %s1082_s2 }
  0x38   :  { %p827_p12 = pnand %p825_p11, %p822_p10 }
  0x3a   :  { %830 = shalt.err (!%p827_p12)
}
  0x3b   :  { %s831_s15 = scalar_lea.vmem %s973_s22, 1024  ;;  %p836_p0 = scmp.lt.s32.totalorder %s973_s22, %s973_s22 }
  0x3c   :  { %p832_p13 = scmp.ne.s32.totalorder %s973_s22, %s831_s15  ;;  %p837_p1 = scmp.lt.s32.totalorder %s831_s15, %s831_s15 }
  0x3e   :  { %p838_p2 = por %p837_p1, %p836_p0 }
  0x40   :  { %p839_p3 = pnand %p838_p2, %p832_p13 }
  0x42   :  { %842 = shalt.err (!%p839_p3)
}
  0x43   :  { %49 = dma.hbm_to_vmem [thread:$0]  %s1082_s2, 1024, %s973_s22, [#allocation6], %s897_s30, %s897_s30, %s898_s6  }
  0x44   :  { %s901_s1 = smov [#allocation10]   ;;  %s843_s20 = scalar_lea.hbm %s1084_s4, 1024 }
  0x45   :  { %s67_s17 = sshll.u32 %s901_s1, 4  ;;  %p844_p4 = scmp.ne.s32.totalorder %s1084_s4, %s843_s20  ;;  %s68_s17 = int_to_ptr.vmem [resolvable:$true] %s67_s17 }
  0x46   :  { %p847_p5 = scmp.lt.u32.totalorder %s843_s20, %s1084_s4 }
  0x48   :  { %p849_p6 = pnand %p847_p5, %p844_p4 }
  0x4a   :  { %852 = shalt.err (!%p849_p6)
}
  0x4b   :  { %s853_s27 = scalar_lea.vmem %s68_s17, 1024  ;;  %p858_p8 = scmp.lt.s32.totalorder %s68_s17, %s68_s17 }
  0x4c   :  { %p854_p7 = scmp.ne.s32.totalorder %s68_s17, %s853_s27  ;;  %p859_p9 = scmp.lt.s32.totalorder %s853_s27, %s853_s27 }
  0x4e   :  { %p860_p10 = por %p859_p9, %p858_p8 }
  0x50   :  { %p861_p11 = pnand %p860_p10, %p854_p7 }
  0x52   :  { %864 = shalt.err (!%p861_p11)
}
  0x53   :  { %73 = dma.hbm_to_vmem [thread:$0]  %s1084_s4, 1024, %s68_s17, [#allocation9], %s897_s30, %s897_s30, %s898_s6  }
  0x54   :  { %887 = dma.done.wait [#allocation3], 128  }
  0x55   :  { %888 = vsyncadd [#allocation3], 4294967168 }
  0x56   :  { %889 = dma.done.wait [#allocation6], 2048  }
  0x57   :  { %890 = vsyncadd [#allocation6], 4294965248 }
  0x58   :  { %891 = dma.done.wait [#allocation9], 2048  }
  0x59   :  { %892 = vsyncadd [#allocation9], 4294965248  ;;  %v902_v0 = vmov 0.0   ;;  %vm903_vm0 = vmmov 0   ;;  %v722_v1 = vld [vmem:[#allocation5] sm:$0xff]   ;;  %v723_v2 = vld [vmem:[#allocation5 + $0x8] sm:$0xff]  }
  0x5a   :  { %631 = vmatprep.subr.bf16.mxu0 %v902_v0  ;;  %647 = vmatprep.mubr.msk.bf16.mxu0 %vm903_vm0, %v902_v0  ;;  %v724_v3 = vld [vmem:[#allocation5 + $0x10] sm:$0xff]   ;;  %v731_v4 = vld [vmem:[#allocation7] sm:$0xff]   ;;  %v725_v5 = vld [vmem:[#allocation5 + $0x18] sm:$0xff]   ;;  %v904_v29 = vmov 0   ;;  %s905_s4 = smov [#allocation11]  }
  0x5b   :  { %651 = vmatprep.subr.bf16.mxu1 %v902_v0  ;;  %667 = vmatprep.mubr.msk.bf16.mxu1 %vm903_vm0, %v902_v0  ;;  %v732_v6 = vld [vmem:[#allocation7 + $0x8] sm:$0xff]   ;;  %v726_v7 = vld [vmem:[#allocation5 + $0x20] sm:$0xff]   ;;  %v733_v8 = vld [vmem:[#allocation7 + $0x10] sm:$0xff]   ;;  %s539_s28 = sshll.u32 %s905_s4, 4  ;;  %s540_s28 = int_to_ptr.vmem [resolvable:$true] %s539_s28 }
  0x5c   :  { %632 = vmatpush3.bf16.msra.mxu0 %v722_v1  ;;  %652 = vmatpush3.bf16.msra.mxu1 %v731_v4  ;;  %v727_v9 = vld [vmem:[#allocation5 + $0x28] sm:$0xff]   ;;  %v734_v10 = vld [vmem:[#allocation7 + $0x18] sm:$0xff]   ;;  %v728_v11 = vld [vmem:[#allocation5 + $0x30] sm:$0xff]   ;;  %s865_s29 = scalar_lea.vmem %s540_s28, 128  ;;  %p870_p13 = scmp.lt.s32.totalorder %s540_s28, %s540_s28 }
  0x5d   :  { %633 = vmatprep.subr.bf16.mxu0 %v902_v0  ;;  %653 = vmatprep.subr.bf16.mxu1 %v902_v0  ;;  %v735_v12 = vld [vmem:[#allocation7 + $0x20] sm:$0xff]   ;;  %v729_v13 = vld [vmem:[#allocation5 + $0x38] sm:$0xff]   ;;  %v736_v14 = vld [vmem:[#allocation7 + $0x28] sm:$0xff]   ;;  %p866_p12 = scmp.ne.s32.totalorder %s540_s28, %s865_s29  ;;  %p871_p0 = scmp.lt.s32.totalorder %s865_s29, %s865_s29 }
  0x5e   :  { %v730_v15 = vld [vmem:[#allocation2] sm:$0xff]   ;;  %v737_v16 = vld [vmem:[#allocation7 + $0x30] sm:$0xff]   ;;  %v739_v18 = vld [vmem:[#allocation8] sm:$0xff]  }
  0x5f   :  { %v738_v17 = vld [vmem:[#allocation7 + $0x38] sm:$0xff]   ;;  %v740_v19 = vld [vmem:[#allocation8 + $0x8] sm:$0xff]   ;;  %v741_v20 = vld [vmem:[#allocation8 + $0x10] sm:$0xff]   ;;  %p872_p1 = por %p871_p0, %p870_p13 }
  0x60   :  { %634 = vmatpush3.bf16.msra.mxu0 %v723_v2  ;;  %654 = vmatpush3.bf16.msra.mxu1 %v732_v6  ;;  %v742_v21 = vld [vmem:[#allocation8 + $0x18] sm:$0xff]   ;;  %v743_v22 = vld [vmem:[#allocation8 + $0x20] sm:$0xff]   ;;  %v744_v23 = vld [vmem:[#allocation8 + $0x28] sm:$0xff]  }
  0x61   :  { %635 = vmatprep.subr.bf16.mxu0 %v902_v0  ;;  %655 = vmatprep.subr.bf16.mxu1 %v902_v0  ;;  %v745_v31 = vld [vmem:[#allocation8 + $0x30] sm:$0xff]   ;;  %v746_v32 = vld [vmem:[#allocation8 + $0x38] sm:$0xff]   ;;  %v747_v33 = vld [vmem:[#allocation10] sm:$0xff]   ;;  %p873_p2 = pnand %p872_p1, %p866_p12 }
  0x62   :  { %v748_v34 = vld [vmem:[#allocation10 + $0x8] sm:$0xff]   ;;  %v749_v35 = vld [vmem:[#allocation10 + $0x10] sm:$0xff]   ;;  %v750_v36 = vld [vmem:[#allocation10 + $0x18] sm:$0xff]  }
  0x63   :  { %v751_v37 = vld [vmem:[#allocation10 + $0x20] sm:$0xff]   ;;  %v752_v38 = vld [vmem:[#allocation10 + $0x28] sm:$0xff]   ;;  %v753_v45 = vld [vmem:[#allocation10 + $0x30] sm:$0xff]  }
  0x64   :  { %636 = vmatpush3.bf16.msra.mxu0 %v724_v3  ;;  %656 = vmatpush3.bf16.msra.mxu1 %v733_v8  ;;  %v754_v46 = vld [vmem:[#allocation10 + $0x38] sm:$0xff]  }
  0x65   :  { %637 = vmatprep.subr.bf16.mxu0 %v902_v0  ;;  %657 = vmatprep.subr.bf16.mxu1 %v902_v0 }
  0x68   :  { %638 = vmatpush3.bf16.msra.mxu0 %v725_v5  ;;  %658 = vmatpush3.bf16.msra.mxu1 %v734_v10 }
  0x69   :  { %639 = vmatprep.subr.bf16.mxu0 %v902_v0  ;;  %659 = vmatprep.subr.bf16.mxu1 %v902_v0 }
  0x6c   :  { %640 = vmatpush3.bf16.msra.mxu0 %v726_v7  ;;  %660 = vmatpush3.bf16.msra.mxu1 %v735_v12 }
  0x6d   :  { %641 = vmatprep.subr.bf16.mxu0 %v902_v0  ;;  %661 = vmatprep.subr.bf16.mxu1 %v902_v0 }
  0x70   :  { %642 = vmatpush3.bf16.msra.mxu0 %v727_v9  ;;  %662 = vmatpush3.bf16.msra.mxu1 %v736_v14 }
  0x71   :  { %643 = vmatprep.subr.bf16.mxu0 %v902_v0  ;;  %663 = vmatprep.subr.bf16.mxu1 %v902_v0 }
  0x74   :  { %644 = vmatpush3.bf16.msra.mxu0 %v728_v11  ;;  %664 = vmatpush3.bf16.msra.mxu1 %v737_v16 }
  0x75   :  { %645 = vmatprep.subr.bf16.mxu0 %v902_v0  ;;  %665 = vmatprep.subr.bf16.mxu1 %v902_v0 }
  0x78   :  { %646 = vmatpush3.bf16.msra.mxu0 %v729_v13  ;;  %666 = vmatpush3.bf16.msra.mxu1 %v738_v17 }
  0x79   :  { %671 = vmatprep.subr.bf16.mxu0 %v902_v0  ;;  %691 = vmatprep.subr.bf16.mxu1 %v902_v0 }
  0x7b   :  { %648 = vmatmul.mubr.bf16.vlgmr.msra.gmra.mrb[0].mxu0 %v730_v15 }
  0x7c   :  { %687 = vmatprep.mubr.msk.bf16.mxu0 %vm903_vm0, %v902_v0  ;;  %672 = vmatpush3.bf16.msra.mxu0 %v739_v18 }
  0x7d   :  { %673 = vmatprep.subr.bf16.mxu0 %v902_v0 }
  0x80   :  { %674 = vmatpush3.bf16.msra.mxu0 %v740_v19 }
  0x81   :  { %675 = vmatprep.subr.bf16.mxu0 %v902_v0 }
  0x84   :  { %676 = vmatpush3.bf16.msra.mxu0 %v741_v20 }
  0x85   :  { %677 = vmatprep.subr.bf16.mxu0 %v902_v0 }
  0x88   :  { %678 = vmatpush3.bf16.msra.mxu0 %v742_v21 }
  0x89   :  { %679 = vmatprep.subr.bf16.mxu0 %v902_v0 }
  0x8c   :  { %680 = vmatpush3.bf16.msra.mxu0 %v743_v22 }
  0x8d   :  { %681 = vmatprep.subr.bf16.mxu0 %v902_v0 }
  0x90   :  { %682 = vmatpush3.bf16.msra.mxu0 %v744_v23 }
  0x91   :  { %683 = vmatprep.subr.bf16.mxu0 %v902_v0 }
  0x94   :  { %684 = vmatpush3.bf16.msra.mxu0 %v745_v31 }
  0x95   :  { %685 = vmatprep.subr.bf16.mxu0 %v902_v0 }
  0x98   :  { %686 = vmatpush3.bf16.msra.mxu0 %v746_v32 }
 0x14e   :  { %v196_v24 = vpop.f32.mrb[0].mxu0 }
 0x14f   :  { %v649_v25 = vpop.f32.mrb[1].mxu0 }
 0x150   :  { %v199_v26 = vpop.f32.mrb[2].mxu0 }
 0x151   :  { %v203_v27 = vpack.c.bf16 %v199_v26, %v196_v24  ;;  %v650_v28 = vpop.f32.mrb[3].mxu0 }
 0x153   :  { %v204_v30 = vmax.bf16 %v904_v29, %v203_v27 }
 0x155   :  { %668 = vmatmul.mubr.bf16.vlgmr.msra.gmra.mrb[0].mxu1 %v204_v30 }
 0x156   :  { %707 = vmatprep.mubr.msk.bf16.mxu1 %vm903_vm0, %v902_v0  ;;  %692 = vmatpush3.bf16.msra.mxu1 %v747_v33 }
 0x157   :  { %693 = vmatprep.subr.bf16.mxu1 %v902_v0 }
 0x15a   :  { %694 = vmatpush3.bf16.msra.mxu1 %v748_v34 }
 0x15b   :  { %695 = vmatprep.subr.bf16.mxu1 %v902_v0 }
 0x15e   :  { %696 = vmatpush3.bf16.msra.mxu1 %v749_v35 }
 0x15f   :  { %697 = vmatprep.subr.bf16.mxu1 %v902_v0 }
 0x162   :  { %698 = vmatpush3.bf16.msra.mxu1 %v750_v36 }
 0x163   :  { %699 = vmatprep.subr.bf16.mxu1 %v902_v0 }
 0x166   :  { %700 = vmatpush3.bf16.msra.mxu1 %v751_v37 }
 0x167   :  { %701 = vmatprep.subr.bf16.mxu1 %v902_v0 }
 0x16a   :  { %702 = vmatpush3.bf16.msra.mxu1 %v752_v38 }
 0x16b   :  { %703 = vmatprep.subr.bf16.mxu1 %v902_v0 }
 0x16e   :  { %704 = vmatpush3.bf16.msra.mxu1 %v753_v45 }
 0x16f   :  { %705 = vmatprep.subr.bf16.mxu1 %v902_v0 }
 0x172   :  { %706 = vmatpush3.bf16.msra.mxu1 %v754_v46 }
 0x228   :  { %v303_v39 = vpop.f32.mrb[0].mxu1 }
 0x229   :  { %v669_v40 = vpop.f32.mrb[1].mxu1 }
 0x22a   :  { %v306_v41 = vpop.f32.mrb[2].mxu1 }
 0x22b   :  { %v310_v42 = vpack.c.bf16 %v306_v41, %v303_v39  ;;  %v670_v43 = vpop.f32.mrb[3].mxu1 }
 0x22d   :  { %v311_v44 = vmax.bf16 %v904_v29, %v310_v42 }
 0x22f   :  { %688 = vmatmul.mubr.bf16.vlgmr.msra.gmra.mrb[4].mxu0 %v311_v44 }
 0x302   :  { %v410_v47 = vpop.f32.mrb[4].mxu0 }
 0x303   :  { %v689_v48 = vpop.f32.mrb[5].mxu0 }
 0x304   :  { %v413_v49 = vpop.f32.mrb[6].mxu0 }
 0x305   :  { %v417_v50 = vpack.c.bf16 %v413_v49, %v410_v47  ;;  %v690_v51 = vpop.f32.mrb[7].mxu0 }
 0x307   :  { %v418_v52 = vmax.bf16 %v904_v29, %v417_v50 }
 0x309   :  { %708 = vmatmul.mubr.bf16.vlgmr.msra.gmra.mrb[4].mxu1 %v418_v52 }
 0x3dc   :  { %v517_v53 = vpop.f32.mrb[4].mxu1 }
 0x3dd   :  { %v709_v54 = vpop.f32.mrb[5].mxu1 }
 0x3de   :  { %v520_v55 = vpop.f32.mrb[6].mxu1 }
 0x3df   :  { %v593_v56 = vpack.c.bf16 %v520_v55, %v517_v53  ;;  %v710_v57 = vpop.f32.mrb[7].mxu1 }
 0x3e1   :  { %594 = vst [vmem:[#allocation11] sm:$0xff] %v593_v56  }
 0x3e2   :  { %876 = shalt.err (!%p873_p2)
}
 0x3e3   :  { %s877_s7 = scalar_lea.hbm %s1085_s5, 128 }
 0x3e4   :  { %p878_p3 = scmp.ne.s32.totalorder %s1085_s5, %s877_s7  ;;  %p881_p4 = scmp.lt.u32.totalorder %s877_s7, %s1085_s5 }
 0x3e6   :  { %p883_p5 = pnand %p881_p4, %p878_p3 }
 0x3e8   :  { %886 = shalt.err (!%p883_p5)
}
 0x3e9   :  { %545 = dma.vmem_to_hbm [thread:$0]  %s540_s28, 128, %s1085_s5, [#allocation4], %s897_s30, %s897_s30, %s898_s6  }
 0x3ea   :  { %893 = dma.done.wait [#allocation4], 128  }
 0x3eb   :  { %894 = vsyncadd [#allocation4], 4294967168 }
 0x3ec   :  { %549 = vsyncpa [#allocation3], 1 }
 0x3ed   :  { %550 = vsyncpa [#allocation6], 1 }
 0x3ee   :  { %551 = vsyncpa [#allocation9], 1 }
 0x3ef   :  { %552 = vsyncpa [#allocation4], 1 }

</bundles_post_ra>
